<compile_context>
chip_gen: v7x
topology: tpu7x:2x2x1
jax: 0.10.0
libtpu: 0.0.40
codegen_flags: <defaults>
</compile_context>

<pallas_src>
import functools

import jax
import jax.numpy as jnp
from jax import lax
from jax.experimental import pallas as pl
from jax.experimental.pallas import tpu as pltpu


# Tables whose total size is below this stay resident in VMEM (fast path).
# Conservative across generations (v7x has 64 MiB VMEM / 32 MiB scoped default).
_FAST_PATH_MAX_TABLE_BYTES = 16 * 2**20


def _round_up(x, m):
    return -(-x // m) * m


# ----------------------------------------------------------------------------
# Fast path: tables resident in VMEM, gather = one-hot matmul on the MXU.
# ----------------------------------------------------------------------------
def _bpr_gather_vmem_kernel(users_ref, items_ref,          # VMEM i32 (TB, 1)
                            user_tab_ref, item_tab_ref,    # VMEM (Nu, E), (Ni, E)
                            u_out_ref, i_out_ref,          # VMEM (TB, E) each
                            *, n_users, n_items):
    u_idx = jnp.clip(users_ref[...], 0, n_users - 1)       # (TB, 1)
    i_idx = jnp.clip(items_ref[...], 0, n_items - 1)
    tb = u_idx.shape[0]

    u_oh = (u_idx == lax.broadcasted_iota(jnp.int32, (tb, n_users), 1)
            ).astype(user_tab_ref.dtype)
    i_oh = (i_idx == lax.broadcasted_iota(jnp.int32, (tb, n_items), 1)
            ).astype(item_tab_ref.dtype)

    u_out_ref[...] = jnp.dot(u_oh, user_tab_ref[...],
                             preferred_element_type=jnp.float32
                             ).astype(u_out_ref.dtype)
    i_out_ref[...] = jnp.dot(i_oh, item_tab_ref[...],
                             preferred_element_type=jnp.float32
                             ).astype(i_out_ref.dtype)


# ----------------------------------------------------------------------------
# HBM path: tables stay in HBM, per-row DMA, double-buffered across batch tiles.
# ----------------------------------------------------------------------------
def _bpr_gather_hbm_kernel(users_ref, items_ref,           # SMEM i32 [B_pad]
                           user_tab_ref, item_tab_ref,     # HBM (ANY)
                           u_out_ref, i_out_ref,           # VMEM (TB, E) each
                           u_stage, i_stage,               # VMEM (2, TB, E)
                           u_sem, i_sem,                   # DMA sems (2,)
                           *, n_users, n_items, tile_b, n_inner):
    core = pl.program_id(0)
    inner = pl.program_id(1)
    slot = inner % 2
    cur_tile = core * n_inner + inner

    def read_ids(flat_idx):
        u = jnp.clip(users_ref[flat_idx], 0, n_users - 1)
        it = jnp.clip(items_ref[flat_idx], 0, n_items - 1)
        return u, it

    def issue(tile_idx, s):
        base = tile_idx * tile_b

        def body(r, carry):
            u, it = read_ids(base + r)
            pltpu.make_async_copy(user_tab_ref.at[u], u_stage.at[s, r],
                                  u_sem.at[s]).start()
            pltpu.make_async_copy(item_tab_ref.at[it], i_stage.at[s, r],
                                  i_sem.at[s]).start()
            return carry

        lax.fori_loop(0, tile_b, body, 0)

    # Prime this core's chain on its first inner step.
    @pl.when(inner == 0)
    def _():
        issue(cur_tile, 0)

    # Prefetch the next tile into the other slot before waiting on this one.
    @pl.when(inner + 1 < n_inner)
    def _():
        issue(cur_tile + 1, 1 - slot)

    # Wait for the current tile.  All rows of a (slot, table) share one
    # semaphore; each wait rebuilds the exact descriptor of the issued copy.
    def wait_body(r, carry):
        base = cur_tile * tile_b
        u, it = read_ids(base + r)
        pltpu.make_async_copy(user_tab_ref.at[u], u_stage.at[slot, r],
                              u_sem.at[slot]).wait()
        pltpu.make_async_copy(item_tab_ref.at[it], i_stage.at[slot, r],
                              i_sem.at[slot]).wait()
        return carry

    lax.fori_loop(0, tile_b, wait_body, 0)

    # Direct stores -- no concat / lane merge, no wrapper re-slicing.
    u_out_ref[...] = u_stage[slot]
    i_out_ref[...] = i_stage[slot]


# ----------------------------------------------------------------------------
# Wrapper
# ----------------------------------------------------------------------------
def bpr_mf_forward(users, items, user_table, item_table, *,
                   tile_b=256, num_cores=2, force_hbm_path=False):
    """Pallas equivalent of BPRMatrixFactorization.forward(users, items)."""
    B = users.shape[0]
    n_users, E = user_table.shape
    n_items, E2 = item_table.shape
    assert E2 == E, "user/item embedding sizes must match"
    assert items.shape[0] == B
    assert user_table.dtype == item_table.dtype, "table dtypes must match"

    users = users.astype(jnp.int32)
    items = items.astype(jnp.int32)

    itemsize = jnp.dtype(user_table.dtype).itemsize
    table_bytes = (n_users + n_items) * E * itemsize
    use_fast = (not force_hbm_path) and table_bytes <= _FAST_PATH_MAX_TABLE_BYTES

    # Batch tile: large by default, clamped to the (sublane-rounded) batch.
    tile_b = min(tile_b, _round_up(B, 8))
    tile_b = _round_up(max(tile_b, 8), 8)

    if use_fast:
        # -------------------- VMEM-resident fast path --------------------
        nsteps = pl.cdiv(B, tile_b)
        b_pad = nsteps * tile_b
        if b_pad != B:
            users = jnp.pad(users, (0, b_pad - B))   # pad with a valid id (0)
            items = jnp.pad(items, (0, b_pad - B))
        users2 = users.reshape(b_pad, 1)
        items2 = items.reshape(b_pad, 1)

        vmem_need = (2 * table_bytes                       # resident tables
                     + 4 * tile_b * E * itemsize           # 2 outputs x 2 bufs
                     + 4 * tile_b * 4 * 2)                 # index blocks
        kernel = functools.partial(_bpr_gather_vmem_kernel,
                                   n_users=n_users, n_items=n_items)

        u_out, i_out = pl.pallas_call(
            kernel,
            out_shape=(jax.ShapeDtypeStruct((b_pad, E), user_table.dtype),
                       jax.ShapeDtypeStruct((b_pad, E), item_table.dtype)),
            grid_spec=pltpu.PrefetchScalarGridSpec(
                num_scalar_prefetch=0,
                grid=(nsteps,),
                in_specs=[
                    pl.BlockSpec((tile_b, 1), lambda i: (i, 0)),
                    pl.BlockSpec((tile_b, 1), lambda i: (i, 0)),
                    pl.BlockSpec((n_users, E), lambda i: (0, 0)),
                    pl.BlockSpec((n_items, E), lambda i: (0, 0)),
                ],
                out_specs=[
                    pl.BlockSpec((tile_b, E), lambda i: (i, 0)),
                    pl.BlockSpec((tile_b, E), lambda i: (i, 0)),
                ],
            ),
            compiler_params=pltpu.CompilerParams(
                dimension_semantics=("parallel",),          # megacore on v7x
                vmem_limit_bytes=int(min(120 * 2**20, vmem_need + (8 << 20))),
            ),
        )(users2, items2, user_table, item_table)
        return u_out[:B], i_out[:B]

    # ---------------------- HBM per-row DMA path ----------------------
    num_cores = max(1, int(num_cores))
    n_tiles = pl.cdiv(B, tile_b)
    n_inner = pl.cdiv(n_tiles, num_cores)
    b_pad = num_cores * n_inner * tile_b
    if b_pad != B:
        users = jnp.pad(users, (0, b_pad - B))               # pad with id 0
        items = jnp.pad(items, (0, b_pad - B))

    kernel = functools.partial(_bpr_gather_hbm_kernel,
                               n_users=n_users, n_items=n_items,
                               tile_b=tile_b, n_inner=n_inner)

    def out_map(c, i, users_smem, items_smem):
        return (c * n_inner + i, 0)

    vmem_need = (2 * 2 * tile_b * E * itemsize               # staging slots
                 + 2 * 2 * tile_b * E * itemsize)            # output bufs
    u_out, i_out = pl.pallas_call(
        kernel,
        out_shape=(jax.ShapeDtypeStruct((b_pad, E), user_table.dtype),
                   jax.ShapeDtypeStruct((b_pad, E), item_table.dtype)),
        grid_spec=pltpu.PrefetchScalarGridSpec(
            num_scalar_prefetch=2,                            # users, items -> SMEM
            grid=(num_cores, n_inner),
            in_specs=[
                pl.BlockSpec(memory_space=pl.ANY),            # user table in HBM
                pl.BlockSpec(memory_space=pl.ANY),            # item table in HBM
            ],
            out_specs=[
                pl.BlockSpec((tile_b, E), out_map),
                pl.BlockSpec((tile_b, E), out_map),
            ],
            scratch_shapes=[
                pltpu.VMEM((2, tile_b, E), user_table.dtype),
                pltpu.VMEM((2, tile_b, E), item_table.dtype),
                pltpu.SemaphoreType.DMA((2,)),
                pltpu.SemaphoreType.DMA((2,)),
            ],
        ),
        compiler_params=pltpu.CompilerParams(
            # Outer axis splits independent per-core chains (v7x 2 TCs);
            # inner axis carries the double-buffer state -> sequential.
            dimension_semantics=("parallel", "arbitrary"),
            vmem_limit_bytes=int(min(120 * 2**20, vmem_need + (16 << 20))),
        ),
    )(users, items, user_table, item_table)
    return u_out[:B], i_out[:B]


def xavier_uniform(key, shape, dtype=jnp.float32):
    """Deterministic equivalent of nn.init.xavier_uniform_ for a 2-D weight."""
    fan_out, fan_in = shape
    bound = jnp.sqrt(6.0 / (fan_in + fan_out)).astype(dtype)
    return jax.random.uniform(key, shape, dtype=dtype, minval=-bound, maxval=bound)


if __name__ == "__main__":
    # Small synthetic stand-ins for the ml-100k vocab sizes; embedding_size 64
    # as in the original script.
    embedding_size = 64
    n_users = 128
    n_items = 256
    batch = 20            # not a multiple of the tile -> exercises padding path

    key = jax.random.PRNGKey(0)
    k_user, k_item, k_uidx, k_iidx = jax.random.split(key, 4)

    user_emb_weight = xavier_uniform(k_user, (n_users, embedding_size))
    item_emb_weight = xavier_uniform(k_item, (n_items, embedding_size))

    users = jax.random.randint(k_uidx, (batch,), 0, n_users, dtype=jnp.int32)
    items = jax.random.randint(k_iidx, (batch,), 0, n_items, dtype=jnp.int32)

    # Plain-JAX reference (embedding lookup semantics).
    u_ref = jnp.take(user_emb_weight, users, axis=0)
    i_ref = jnp.take(item_emb_weight, items, axis=0)

    # 1) Default dispatch -> VMEM-resident fast path (ml-100k-scale tables).
    u_out, i_out = bpr_mf_forward(users, items, user_emb_weight, item_emb_weight)
    u_out = jax.block_until_ready(u_out)
    i_out = jax.block_until_ready(i_out)
    assert u_out.shape == (batch, embedding_size)
    assert i_out.shape == (batch, embedding_size)
    assert jnp.allclose(u_out, u_ref, atol=1e-6)
    assert jnp.allclose(i_out, i_ref, atol=1e-6)

    # 2) Force the large-table HBM per-row-DMA path at the same small shapes
    #    so both code paths are validated.
    u_out2, i_out2 = bpr_mf_forward(users, items, user_emb_weight,
                                    item_emb_weight, tile_b=16,
                                    force_hbm_path=True)
    u_out2 = jax.block_until_ready(u_out2)
    i_out2 = jax.block_until_ready(i_out2)
    assert jnp.allclose(u_out2, u_ref)
    assert jnp.allclose(i_out2, i_ref)

    print("KERNEL_OK")
</pallas_src>

<mosaic_0001>
module attributes {stable_mosaic.version = 11 : i64} {
  func.func @_bpr_gather_vmem_kernel(%arg0: i32, %arg1: memref<24x1xi32, #tpu.memory_space<vmem>>, %arg2: memref<24x1xi32, #tpu.memory_space<vmem>>, %arg3: memref<128x64xf32, #tpu.memory_space<vmem>>, %arg4: memref<256x64xf32, #tpu.memory_space<vmem>>, %arg5: memref<24x64xf32, #tpu.memory_space<vmem>>, %arg6: memref<24x64xf32, #tpu.memory_space<vmem>>) attributes {dimension_semantics = [#tpu.dimension_semantics<parallel>], iteration_bounds = array<i64: 1>, scalar_prefetch = 0 : i64, scratch_operands = 0 : i64, tpu.core_type = #tpu.core_type<tc>, window_params = [{transform_indices = @transform_0, window_bounds = array<i64: 24, 1>}, {transform_indices = @transform_1, window_bounds = array<i64: 24, 1>}, {pipeline_mode = #tpu.pipeline_mode<synchronous>, transform_indices = @transform_2, window_bounds = array<i64: 128, 64>}, {pipeline_mode = #tpu.pipeline_mode<synchronous>, transform_indices = @transform_3, window_bounds = array<i64: 256, 64>}, {transform_indices = @transform_4, window_bounds = array<i64: 24, 64>}, {transform_indices = @transform_5, window_bounds = array<i64: 24, 64>}]} {
    %c0 = arith.constant 0 : index
    %c0_0 = arith.constant 0 : index
    %0 = vector.load %arg1[%c0, %c0_0] : memref<24x1xi32, #tpu.memory_space<vmem>>, vector<24x1xi32>
    %c0_i32 = arith.constant 0 : i32
    %c127_i32 = arith.constant 127 : i32
    %1 = vector.broadcast %c0_i32 : i32 to vector<24x1xi32>
    %2 = arith.maxsi %1, %0 : vector<24x1xi32>
    %3 = vector.broadcast %c127_i32 : i32 to vector<24x1xi32>
    %4 = arith.minsi %3, %2 : vector<24x1xi32>
    %c0_1 = arith.constant 0 : index
    %c0_2 = arith.constant 0 : index
    %5 = vector.load %arg2[%c0_1, %c0_2] : memref<24x1xi32, #tpu.memory_space<vmem>>, vector<24x1xi32>
    %c0_i32_3 = arith.constant 0 : i32
    %c255_i32 = arith.constant 255 : i32
    %6 = vector.broadcast %c0_i32_3 : i32 to vector<24x1xi32>
    %7 = arith.maxsi %6, %5 : vector<24x1xi32>
    %8 = vector.broadcast %c255_i32 : i32 to vector<24x1xi32>
    %9 = arith.minsi %8, %7 : vector<24x1xi32>
    %10 = tpu.iota {dimensions = array<i32: 1>} : vector<24x128xi32>
    %11 = vector.broadcast %4 : vector<24x1xi32> to vector<24x128xi32>
    %12 = arith.cmpi eq, %11, %10 : vector<24x128xi32>
    %13 = arith.extui %12 : vector<24x128xi1> to vector<24x128xi32>
    %14 = arith.sitofp %13 : vector<24x128xi32> to vector<24x128xf32>
    %15 = tpu.iota {dimensions = array<i32: 1>} : vector<24x256xi32>
    %16 = vector.broadcast %9 : vector<24x1xi32> to vector<24x256xi32>
    %17 = arith.cmpi eq, %16, %15 : vector<24x256xi32>
    %18 = arith.extui %17 : vector<24x256xi1> to vector<24x256xi32>
    %19 = arith.sitofp %18 : vector<24x256xi32> to vector<24x256xf32>
    %c0_4 = arith.constant 0 : index
    %c0_5 = arith.constant 0 : index
    %20 = vector.load %arg3[%c0_4, %c0_5] : memref<128x64xf32, #tpu.memory_space<vmem>>, vector<128x64xf32>
    %cst = arith.constant dense<0.000000e+00> : vector<24x64xf32>
    %21 = tpu.matmul %14, %20, %cst {dimension_numbers = #tpu.dot_dimension_numbers<[1], [0], [0], [1], [0, 0, 1, 1], [], []>} : vector<24x128xf32>, vector<128x64xf32>, vector<24x64xf32> -> vector<24x64xf32>
    %c0_6 = arith.constant 0 : index
    %c0_7 = arith.constant 0 : index
    %22 = vector.load %arg5[%c0_6, %c0_7] : memref<24x64xf32, #tpu.memory_space<vmem>>, vector<24x64xf32>
    tpu.vector_store %arg5[%c0_6, %c0_7], %21 {strides = array<i32>} : memref<24x64xf32, #tpu.memory_space<vmem>>, vector<24x64xf32>,
    %c0_8 = arith.constant 0 : index
    %c0_9 = arith.constant 0 : index
    %23 = vector.load %arg4[%c0_8, %c0_9] : memref<256x64xf32, #tpu.memory_space<vmem>>, vector<256x64xf32>
    %cst_10 = arith.constant dense<0.000000e+00> : vector<24x64xf32>
    %24 = tpu.matmul %19, %23, %cst_10 {dimension_numbers = #tpu.dot_dimension_numbers<[1], [0], [0], [1], [0, 0, 1, 1], [], []>} : vector<24x256xf32>, vector<256x64xf32>, vector<24x64xf32> -> vector<24x64xf32>
    %c0_11 = arith.constant 0 : index
    %c0_12 = arith.constant 0 : index
    %25 = vector.load %arg6[%c0_11, %c0_12] : memref<24x64xf32, #tpu.memory_space<vmem>>, vector<24x64xf32>
    tpu.vector_store %arg6[%c0_11, %c0_12], %24 {strides = array<i32>} : memref<24x64xf32, #tpu.memory_space<vmem>>, vector<24x64xf32>,
    return
  }
  func.func @transform_0(%arg0: i32) -> (i32, i32) {
    %c0_i32 = arith.constant 0 : i32
    %c0_i32_0 = arith.constant 0 : i32
    return %arg0, %c0_i32 : i32, i32
  }
  func.func @transform_1(%arg0: i32) -> (i32, i32) {
    %c0_i32 = arith.constant 0 : i32
    %c0_i32_0 = arith.constant 0 : i32
    return %arg0, %c0_i32 : i32, i32
  }
  func.func @transform_2(%arg0: i32) -> (i32, i32) {
    %c0_i32 = arith.constant 0 : i32
    %c0_i32_0 = arith.constant 0 : i32
    %c0_i32_1 = arith.constant 0 : i32
    return %c0_i32, %c0_i32_0 : i32, i32
  }
  func.func @transform_3(%arg0: i32) -> (i32, i32) {
    %c0_i32 = arith.constant 0 : i32
    %c0_i32_0 = arith.constant 0 : i32
    %c0_i32_1 = arith.constant 0 : i32
    return %c0_i32, %c0_i32_0 : i32, i32
  }
  func.func @transform_4(%arg0: i32) -> (i32, i32) {
    %c0_i32 = arith.constant 0 : i32
    %c0_i32_0 = arith.constant 0 : i32
    return %arg0, %c0_i32 : i32, i32
  }
  func.func @transform_5(%arg0: i32) -> (i32, i32) {
    %c0_i32 = arith.constant 0 : i32
    %c0_i32_0 = arith.constant 0 : i32
    return %arg0, %c0_i32 : i32, i32
  }
}

</mosaic_0001>

<bundles_post_ra>
// kernel: tpu_custom_call.1
= control target key start
LH: loop header
LB: loop body
LE: loop exit
PB: predicated region body
PF: predicated region fallthrough
CT: control target
= control target key end

     0   :  { %11 = vsyncpa [#allocation3], 0  ;;  %v580_v3 = vmov 0   ;;  %v581_v12 = vmov 0.0|0.0   ;;  %vm582_vm12 = vmmov 0   ;;  %v583_v47 = vmov 0.0   ;;  %s833_s0 = inlined_call_operand.vmem [shape: s32[24,1], index: 0, kind: input, shape index: {}]   ;;  %s834_s1 = inlined_call_operand.vmem [shape: s32[24,1], index: 1, kind: input, shape index: {}]   ;;  %s835_s2 = inlined_call_operand.vmem [shape: f32[128,64], index: 2, kind: input, shape index: {}]   ;;  %s836_s3 = inlined_call_operand.vmem [shape: f32[256,64], index: 3, kind: input, shape index: {}]   ;;  %s837_s4 = inlined_call_operand.hbm [shape: f32[24,64], index: 4, kind: output, shape index: {0}]   ;;  %s838_s5 = inlined_call_operand.hbm [shape: f32[24,64], index: 5, kind: output, shape index: {1}]  }
   0x1   :  { %v37_v0 = vld [vmem:[%s834_s1 + $0x8] sm:$0xff]  ;;  %v36_v1 = vld [vmem:[%s834_s1] sm:$0xff]  ;;  %531 = vset.pattern.permute.xlu1 %v580_v3  ;;  %530 = vset.pattern.permute.xlu0 %v580_v3  ;;  %v23_v5 = vld [vmem:[%s833_s0 + $0x10] sm:$0xff] }
   0x2   :  { %v22_v2 = vld [vmem:[%s833_s0 + $0x8] sm:$0xff]  ;;  %vm41_vm0 = vcmp.gt.s32.totalorder %v37_v0, 0  ;;  %vm39_vm1 = vcmp.gt.s32.totalorder %v36_v1, 0  ;;  %v21_v4 = vld [vmem:[%s833_s0] sm:$0xff]  ;;  %v38_v6 = vld [vmem:[%s834_s1 + $0x10] sm:$0xff]  ;;  %465 = vmatprep.subr.bf16.mxu0 %v581_v12  ;;  %vm28_vm8 = vcmp.gt.s32.totalorder %v23_v5, 0  ;;  %456 = vmatprep.mubr.msk.f32.mxu0 %vm582_vm12, %v583_v47 }
   0x3   :  { %vm26_vm2 = vcmp.gt.s32.totalorder %v22_v2, 0  ;;  %v42_v7 = vsel %vm41_vm0, %v37_v0, 0  ;;  %v40_v8 = vsel %vm39_vm1, %v36_v1, 0  ;;  %vm24_vm3 = vcmp.gt.s32.totalorder %v21_v4, 0  ;;  %v215_v10 = vld [vmem:[%s836_s3 + $0x80] sm:$0xff]  ;;  %v216_v11 = vld [vmem:[%s836_s3 + $0x88] sm:$0xff] }
   0x4   :  { %v27_v9 = vsel %vm26_vm2, %v22_v2, 0  ;;  %vm47_vm4 = vcmp.lt.s32.totalorder %v42_v7, 255  ;;  %vm45_vm5 = vcmp.lt.s32.totalorder %v40_v8, 255  ;;  %v25_v13 = vsel %vm24_vm3, %v21_v4, 0  ;;  %v199_v14 = vld [vmem:[%s836_s3] sm:$0xff]  ;;  %v200_v15 = vld [vmem:[%s836_s3 + $0x8] sm:$0xff] }
   0x5   :  { %vm32_vm6 = vcmp.lt.s32.totalorder %v27_v9, 127  ;;  %v48_v16 = vsel %vm47_vm4, %v42_v7, 255  ;;  %v46_v17 = vsel %vm45_vm5, %v40_v8, 255  ;;  %vm30_vm7 = vcmp.lt.s32.totalorder %v25_v13, 127  ;;  %v99_v19 = vld [vmem:[%s835_s2] sm:$0xff]  ;;  %v100_v20 = vld [vmem:[%s835_s2 + $0x8] sm:$0xff] }
   0x6   :  { %v33_v18 = vsel %vm32_vm6, %v27_v9, 127  ;;  %76 = vperm.xlu1 %531, %v48_v16   ;;  %73 = vperm.xlu0 %530, %v46_v17   ;;  %v31_v21 = vsel %vm30_vm7, %v25_v13, 127  ;;  %vm43_vm9 = vcmp.gt.s32.totalorder %v38_v6, 0  ;;  %v489_v22 = vpack.c.bf16 %v216_v11, %v215_v10  ;;  %v217_v23 = vld [vmem:[%s836_s3 + $0x90] sm:$0xff]  ;;  %v218_v24 = vld [vmem:[%s836_s3 + $0x98] sm:$0xff]  ;;  %v219_v34 = vld [vmem:[%s836_s3 + $0xa0] sm:$0xff] }
   0x7   :  { %v201_v25 = vld [vmem:[%s836_s3 + $0x10] sm:$0xff]  ;;  %v29_v26 = vsel %vm28_vm8, %v23_v5, 0  ;;  %v44_v27 = vsel %vm43_vm9, %v38_v6, 0  ;;  %v491_v28 = vpack.c.bf16 %v200_v15, %v199_v14  ;;  %v466_v29 = vpack.c.bf16 %v100_v20, %v99_v19  ;;  %v202_v30 = vld [vmem:[%s836_s3 + $0x18] sm:$0xff]  ;;  %v220_v35 = vld [vmem:[%s836_s3 + $0xa8] sm:$0xff] }
   0x8   :  { %v101_v31 = vld [vmem:[%s835_s2 + $0x10] sm:$0xff]  ;;  %v102_v32 = vld [vmem:[%s835_s2 + $0x18] sm:$0xff]  ;;  %vm34_vm10 = vcmp.lt.s32.totalorder %v29_v26, 127  ;;  %vm49_vm11 = vcmp.lt.s32.totalorder %v44_v27, 255  ;;  %490 = vmatprep.subr.bf16.mxu1 %v489_v22  ;;  %v493_v33 = vpack.c.bf16 %v218_v24, %v217_v23  ;;  %v495_v36 = vpack.c.bf16 %v202_v30, %v201_v25  ;;  %v203_v38 = vld [vmem:[%s836_s3 + $0x20] sm:$0xff] }
   0x9   :  { %492 = vmatpush3.bf16.msra.mxu1 %v491_v28  ;;  %467 = vmatpush3.bf16.msra.mxu0 %v466_v29  ;;  %v469_v37 = vpack.c.bf16 %v102_v32, %v101_v31  ;;  %v35_v39 = vsel %vm34_vm10, %v29_v26, 127  ;;  %v204_v40 = vld [vmem:[%s836_s3 + $0x28] sm:$0xff]  ;;  %v103_v41 = vld [vmem:[%s835_s2 + $0x20] sm:$0xff]  ;;  %v50_v43 = vsel %vm49_vm11, %v44_v27, 255  ;;  %v497_v44 = vpack.c.bf16 %v220_v35, %v219_v34  ;;  %v221_v45 = vld [vmem:[%s836_s3 + $0xb0] sm:$0xff] }
   0xa   :  { %57 = vperm.xlu1 %531, %v33_v18   ;;  %54 = vperm.xlu0 %530, %v31_v21   ;;  %v104_v42 = vld [vmem:[%s835_s2 + $0x28] sm:$0xff]  ;;  %v222_v46 = vld [vmem:[%s836_s3 + $0xb8] sm:$0xff]  ;;  %v499_v48 = vpack.c.bf16 %v204_v40, %v203_v38  ;;  %v205_v50 = vld [vmem:[%s836_s3 + $0x30] sm:$0xff] }
   0xb   :  { %494 = vmatprep.subr.bf16.mxu1 %v493_v33  ;;  %468 = vmatprep.subr.bf16.mxu0 %v581_v12  ;;  %v472_v49 = vpack.c.bf16 %v104_v42, %v103_v41  ;;  %v501_v51 = vpack.c.bf16 %v222_v46, %v221_v45  ;;  %v206_v52 = vld [vmem:[%s836_s3 + $0x38] sm:$0xff]  ;;  %v105_v53 = vld [vmem:[%s835_s2 + $0x30] sm:$0xff]  ;;  %v223_v55 = vld [vmem:[%s836_s3 + $0xc0] sm:$0xff] }
   0xc   :  { %v106_v54 = vld [vmem:[%s835_s2 + $0x38] sm:$0xff]  ;;  %v224_v56 = vld [vmem:[%s836_s3 + $0xc8] sm:$0xff]  ;;  %v503_v57 = vpack.c.bf16 %v206_v52, %v205_v50  ;;  %v207_v59 = vld [vmem:[%s836_s3 + $0x40] sm:$0xff] }
   0xd   :  { %496 = vmatpush3.bf16.msra.mxu1 %v495_v36  ;;  %470 = vmatpush3.bf16.msra.mxu0 %v469_v37  ;;  %v475_v58 = vpack.c.bf16 %v106_v54, %v105_v53  ;;  %v505_v60 = vpack.c.bf16 %v224_v56, %v223_v55  ;;  %v208_v61 = vld [vmem:[%s836_s3 + $0x48] sm:$0xff]  ;;  %v107_v62 = vld [vmem:[%s835_s2 + $0x40] sm:$0xff]  ;;  %v225_v0 = vld [vmem:[%s836_s3 + $0xd0] sm:$0xff] }
   0xe   :  { %60 = vperm.xlu1 %531, %v35_v39   ;;  %79 = vperm.xlu0 %530, %v50_v43   ;;  %v108_v63 = vld [vmem:[%s835_s2 + $0x48] sm:$0xff]  ;;  %v226_v1 = vld [vmem:[%s836_s3 + $0xd8] sm:$0xff] }
   0xf   :  { %498 = vmatprep.subr.bf16.mxu1 %v497_v44  ;;  %471 = vmatprep.subr.bf16.mxu0 %v581_v12 }
  0x11   :  { %500 = vmatpush3.bf16.msra.mxu1 %v499_v48  ;;  %473 = vmatpush3.bf16.msra.mxu0 %v472_v49 }
  0x12   :  { %502 = vmatprep.subr.bf16.mxu1 %v501_v51  ;;  %474 = vmatprep.subr.bf16.mxu0 %v581_v12 }
  0x13   :  { %12 = vsyncpa [#allocation5], 0  ;;  %v507_v2 = vpack.c.bf16 %v208_v61, %v207_v59  ;;  %v478_v3 = vpack.c.bf16 %v108_v63, %v107_v62  ;;  %v209_v4 = vld [vmem:[%s836_s3 + $0x50] sm:$0xff]  ;;  %v509_v5 = vpack.c.bf16 %v226_v1, %v225_v0  ;;  %v210_v6 = vld [vmem:[%s836_s3 + $0x58] sm:$0xff]  ;;  %v51_v30 = vlaneseq  ;;  %s586_s18 = smov [#allocation4]  }
  0x14   :  { %v109_v7 = vld [vmem:[%s835_s2 + $0x50] sm:$0xff]  ;;  %v110_v8 = vld [vmem:[%s835_s2 + $0x58] sm:$0xff]  ;;  %v227_v9 = vld [vmem:[%s836_s3 + $0xe0] sm:$0xff]  ;;  %v511_v11 = vpack.c.bf16 %v210_v6, %v209_v4  ;;  %v584_v35 = vmov 1.0   ;;  %vm195_vm6 = vcmask 523264   ;;  %s331_s19 = sshll.u32 %s586_s18, 4  ;;  %s800_s19 = int_to_ptr.vmem [resolvable:$true] %s331_s19 }
  0x15   :  { %504 = vmatpush3.bf16.msra.mxu1 %v503_v57  ;;  %476 = vmatpush3.bf16.msra.mxu0 %v475_v58  ;;  %v228_v10 = vld [vmem:[%s836_s3 + $0xe8] sm:$0xff]  ;;  %v481_v13 = vpack.c.bf16 %v110_v8, %v109_v7  ;;  %v211_v14 = vld [vmem:[%s836_s3 + $0x60] sm:$0xff]  ;;  %v229_v19 = vld [vmem:[%s836_s3 + $0xf0] sm:$0xff]  ;;  %v52_v31 = vand.u32 127, %v51_v30 }
  0x16   :  { %506 = vmatprep.subr.bf16.mxu1 %v505_v60  ;;  %477 = vmatprep.subr.bf16.mxu0 %v581_v12  ;;  %v513_v15 = vpack.c.bf16 %v228_v10, %v227_v9  ;;  %v212_v16 = vld [vmem:[%s836_s3 + $0x68] sm:$0xff]  ;;  %v111_v17 = vld [vmem:[%s835_s2 + $0x60] sm:$0xff]  ;;  %v230_v20 = vld [vmem:[%s836_s3 + $0xf8] sm:$0xff] }
  0x17   :  { %v112_v18 = vld [vmem:[%s835_s2 + $0x68] sm:$0xff]  ;;  %v515_v21 = vpack.c.bf16 %v212_v16, %v211_v14  ;;  %v213_v23 = vld [vmem:[%s836_s3 + $0x70] sm:$0xff]  ;;  %v517_v24 = vpack.c.bf16 %v230_v20, %v229_v19  ;;  %v214_v25 = vld [vmem:[%s836_s3 + $0x78] sm:$0xff]  ;;  %v71_v32 = vadd.s32 128, %v52_v31 }
  0x18   :  { %v484_v22 = vpack.c.bf16 %v112_v18, %v111_v17  ;;  %v113_v26 = vld [vmem:[%s835_s2 + $0x70] sm:$0xff]  ;;  %v114_v27 = vld [vmem:[%s835_s2 + $0x78] sm:$0xff]  ;;  %v519_v28 = vpack.c.bf16 %v214_v25, %v213_v23  ;;  %s585_s2 = smov [#allocation2]  }
  0x19   :  { %508 = vmatpush3.bf16.msra.mxu1 %v507_v2  ;;  %479 = vmatpush3.bf16.msra.mxu0 %v478_v3  ;;  %v487_v29 = vpack.c.bf16 %v114_v27, %v113_v26  ;;  %s319_s3 = sshll.u32 %s585_s2, 4  ;;  %s320_s3 = int_to_ptr.vmem [resolvable:$true] %s319_s3 }
  0x1a   :  { %510 = vmatprep.subr.bf16.mxu1 %v509_v5  ;;  %480 = vmatprep.subr.bf16.mxu0 %v581_v12  ;;  %s532_s20 = scalar_lea.vmem %s320_s3, 384  ;;  %p537_p1 = scmp.lt.s32.totalorder %s320_s3, %s320_s3 }
  0x1b   :  { %p533_p0 = scmp.ne.s32.totalorder %s320_s3, %s532_s20  ;;  %p538_p2 = scmp.lt.s32.totalorder %s532_s20, %s532_s20 }
  0x1d   :  { %512 = vmatpush3.bf16.msra.mxu1 %v511_v11  ;;  %482 = vmatpush3.bf16.msra.mxu0 %v481_v13  ;;  %p539_p3 = por %p538_p2, %p537_p1 }
  0x1e   :  { %514 = vmatprep.subr.bf16.mxu1 %v513_v15  ;;  %483 = vmatprep.subr.bf16.mxu0 %v581_v12 }
  0x1f   :  { %p540_p4 = pnand %p539_p3, %p533_p0 }
  0x21   :  { %516 = vmatpush3.bf16.msra.mxu1 %v515_v21  ;;  %485 = vmatpush3.bf16.msra.mxu0 %v484_v22 }
  0x22   :  { %518 = vmatprep.subr.bf16.mxu1 %v517_v24  ;;  %486 = vmatprep.subr.bf16.mxu0 %v581_v12 }
  0x25   :  { %520 = vmatpush3.bf16.msra.mxu1 %v519_v28  ;;  %488 = vmatpush3.bf16.msra.mxu0 %v487_v29 }
  0x85   :  { %v77_v33 = vpop.permute.xlu1 %76  ;;  %v74_v34 = vpop.permute.xlu0 %73 }
  0x86   :  { %vm84_vm13 = vcmp.eq.s32.totalorder %v77_v33, %v71_v32  ;;  %vm81_vm14 = vcmp.eq.s32.totalorder %v74_v34, %v52_v31  ;;  %vm82_vm15 = vcmp.eq.s32.totalorder %v74_v34, %v71_v32  ;;  %vm83_vm0 = vcmp.eq.s32.totalorder %v77_v33, %v52_v31 }
  0x87   :  { %358 = vmatprep.mubr.msk.f32.mxu1 %vm82_vm15, %v584_v35 }
  0x88   :  { %359 = vmatmul.mubr.msk.f32.vlgmr.msra.gmra.mrb[0].mxu1 %vm81_vm14, %v584_v35 }
  0x89   :  { %v58_v36 = vpop.permute.xlu1 %57  ;;  %v55_v37 = vpop.permute.xlu0 %54  ;;  %360 = vmatprep.mubr.msk.f32.mxu1 %vm84_vm13, %v584_v35 }
  0x8a   :  { %vm62_vm1 = vcmp.eq.s32.totalorder %v55_v37, %v52_v31  ;;  %vm63_vm2 = vcmp.eq.s32.totalorder %v58_v36, %v52_v31 }
  0x8b   :  { %457 = vmatmul.mubr.msk.f32.vlgmr.msra.gmra.mrb[0].mxu0 %vm62_vm1, %v584_v35 }
  0x8c   :  { %361 = vmatmul.mubr.msk.f32.gmra.mrb[2].mxu1 %vm83_vm0, %v584_v35  ;;  %459 = vmatprep.mubr.msk.f32.mxu0 %vm582_vm12, %v583_v47 }
  0x8d   :  { %v80_v12 = vpop.permute.xlu0 %79  ;;  %v61_v38 = vpop.permute.xlu1 %60 }
  0x8e   :  { %vm85_vm3 = vcmp.eq.s32.totalorder %v80_v12, %v52_v31  ;;  %vm86_vm4 = vcmp.eq.s32.totalorder %v80_v12, %v71_v32  ;;  %vm64_vm5 = vcmp.eq.s32.totalorder %v61_v38, %v52_v31 }
  0x8f   :  { %460 = vmatmul.mubr.msk.f32.gmra.mrb[2].mxu0 %vm63_vm2, %v584_v35  ;;  %362 = vmatprep.mubr.msk.f32.mxu1 %vm86_vm4, %v584_v35 }
  0x90   :  { %363 = vmatmul.mubr.msk.f32.gmra.mrb[4].mxu1 %vm85_vm3, %v584_v35  ;;  %462 = vmatprep.mubr.msk.f32.mxu0 %vm582_vm12, %v583_v47 }
  0x93   :  { %463 = vmatmul.mubr.msk.f32.gmra.mrb[4].mxu0 %vm64_vm5, %v584_v35 }
 0x15b   :  { %v415_v39 = vpop.f32.mrb[0].mxu1 }
 0x15c   :  { %v416_v40 = vpop.f32.mrb[1].mxu1 }
 0x15d   :  { %v417_v41 = vadd.f32 %v416_v40, %v415_v39 }
 0x15e   :  { %v181_v42 = vpop.f32.mrb[0].mxu0 }
 0x15f   :  { %311 = vst.msk [vmem:[#allocation4] sm:$0xff] %vm195_vm6, %v417_v41  ;;  %196 = vst.msk [vmem:[#allocation2] sm:$0xff] %vm195_vm6, %v181_v42  ;;  %v458_v43 = vpop.f32.mrb[1].mxu0  ;;  %v418_v44 = vpop.f32.mrb[2].mxu1 }
 0x160   :  { %v419_v45 = vpop.f32.mrb[3].mxu1 }
 0x161   :  { %v420_v46 = vadd.f32 %v419_v45, %v418_v44 }
 0x162   :  { %v186_v48 = vpop.f32.mrb[2].mxu0 }
 0x163   :  { %312 = vst.msk [vmem:[#allocation4 + $0x8] sm:$0xff] %vm195_vm6, %v420_v46  ;;  %197 = vst.msk [vmem:[#allocation2 + $0x8] sm:$0xff] %vm195_vm6, %v186_v48  ;;  %v461_v47 = vpop.f32.mrb[3].mxu0  ;;  %v421_v49 = vpop.f32.mrb[4].mxu1 }
 0x164   :  { %v422_v50 = vpop.f32.mrb[5].mxu1 }
 0x165   :  { %v423_v51 = vadd.f32 %v422_v50, %v421_v49 }
 0x166   :  { %v191_v52 = vpop.f32.mrb[4].mxu0 }
 0x167   :  { %313 = vst.msk [vmem:[#allocation4 + $0x10] sm:$0xff] %vm195_vm6, %v423_v51  ;;  %198 = vst.msk [vmem:[#allocation2 + $0x10] sm:$0xff] %vm195_vm6, %v191_v52  ;;  %v464_v53 = vpop.f32.mrb[5].mxu0 }
 0x168   :  { %543 = shalt.err (!%p540_p4)
}
 0x169   :  { %s544_s23 = scalar_lea.hbm %s837_s4, 384 }
 0x16a   :  { %p545_p5 = scmp.ne.s32.totalorder %s837_s4, %s544_s23  ;;  %p548_p6 = scmp.lt.u32.totalorder %s544_s23, %s837_s4 }
 0x16c   :  { %p550_p7 = pnand %p548_p6, %p545_p5 }
 0x16e   :  { %553 = shalt.err (!%p550_p7)
}
 0x16f   :  { %s587_s28 = smov 128   ;;  %s588_s29 = smov 8  }
 0x170   :  { %325 = dma.vmem_to_hbm [thread:$0]  %s320_s3, 384, %s837_s4, [#allocation3], %s587_s28, %s587_s28, %s588_s29  }
 0x171   :  { %s554_s7 = scalar_lea.vmem %s800_s19, 384  ;;  %p559_p9 = scmp.lt.s32.totalorder %s800_s19, %s800_s19 }
 0x172   :  { %p555_p8 = scmp.ne.s32.totalorder %s800_s19, %s554_s7  ;;  %p560_p10 = scmp.lt.s32.totalorder %s554_s7, %s554_s7 }
 0x174   :  { %p561_p11 = por %p560_p10, %p559_p9 }
 0x176   :  { %p562_p12 = pnand %p561_p11, %p555_p8 }
 0x178   :  { %565 = shalt.err (!%p562_p12)
}
 0x179   :  { %s566_s1 = scalar_lea.hbm %s838_s5, 384 }
 0x17a   :  { %p567_p13 = scmp.ne.s32.totalorder %s838_s5, %s566_s1  ;;  %p570_p0 = scmp.lt.u32.totalorder %s566_s1, %s838_s5 }
 0x17c   :  { %p572_p1 = pnand %p570_p0, %p567_p13 }
 0x17e   :  { %575 = shalt.err (!%p572_p1)
}
 0x17f   :  { %337 = dma.vmem_to_hbm [thread:$0]  %s800_s19, 384, %s838_s5, [#allocation5], %s587_s28, %s587_s28, %s588_s29  }
 0x180   :  { %576 = dma.done.wait [#allocation3], 384  }
 0x181   :  { %577 = vsyncadd [#allocation3], 4294966912 }
 0x182   :  { %578 = dma.done.wait [#allocation5], 384  }
 0x183   :  { %579 = vsyncadd [#allocation5], 4294966912 }
 0x184   :  { %344 = vsyncpa [#allocation3], 1 }
 0x185   :  { %345 = vsyncpa [#allocation5], 1 }

</bundles_post_ra>
